<compile_context>
chip_gen: v6e
topology: v6e:2x2x1
jax: 0.10.0
libtpu: 0.0.40
codegen_flags: <defaults>
</compile_context>

<pallas_src>
import functools
import math

import jax
import jax.numpy as jnp
from jax import lax
from jax.experimental import pallas as pl
from jax.experimental.pallas import tpu as pltpu


# 48 MiB scoped VMEM: above the 16/32 MiB defaults, below v7x's 64 MiB physical.
_VMEM_LIMIT = 48 * 1024 * 1024


def _pick_tile(dim, target, align):
    """Largest tile <= target that divides `dim` and is a multiple of `align`,
    falling back to the full dimension (always legal for a BlockSpec)."""
    if dim <= target:
        return dim
    t = (target // align) * align
    while t >= align:
        if dim % t == 0:
            return t
        t -= align
    return dim


def _gelu_erf(y):
    # exact (erf) GELU -> matches torch.nn.GELU()
    return 0.5 * y * (1.0 + lax.erf(y * (1.0 / math.sqrt(2.0))))


# ----------------------------- Pallas kernels -----------------------------

def _matmul_kernel(x_ref, w_ref, b_ref, *rest, act, has_residual):
    """Tiled y = x @ w + b [(+gelu)] [(+residual)], K-reduction on grid axis 2."""
    if has_residual:
        res_ref, o_ref, acc_ref = rest
    else:
        res_ref = None
        o_ref, acc_ref = rest

    k = pl.program_id(2)

    @pl.when(k == 0)
    def _():
        acc_ref[...] = jnp.zeros_like(acc_ref)

    acc_ref[...] += jnp.dot(x_ref[...].astype(jnp.bfloat16),
                            w_ref[...].astype(jnp.bfloat16),
                            preferred_element_type=jnp.float32)

    @pl.when(k == pl.num_programs(2) - 1)
    def _():
        y = acc_ref[...] + b_ref[...].astype(jnp.float32)
        if act == "gelu":
            y = _gelu_erf(y)
        if has_residual:
            y = y + res_ref[...].astype(jnp.float32)
        o_ref[...] = y.astype(o_ref.dtype)


def pallas_linear(x, w, b, act=None, residual=None,
                  tm_target=256, tn_target=256, tk_target=512):
    """x: (R, Kin), w: (Kin, Kout), b: (Kout,) -> x @ w + b (+act) (+residual)."""
    R, Kin = x.shape
    Kout = w.shape[1]
    tm = _pick_tile(R, tm_target, 8)
    tn = _pick_tile(Kout, tn_target, 128)
    tk = _pick_tile(Kin, tk_target, 128)
    grid = (R // tm, Kout // tn, Kin // tk)

    in_specs = [
        pl.BlockSpec((tm, tk), lambda i, j, k: (i, k)),
        pl.BlockSpec((tk, tn), lambda i, j, k: (k, j)),
        pl.BlockSpec((1, tn), lambda i, j, k: (0, j)),
    ]
    args = [x, w, b.reshape(1, Kout)]
    if residual is not None:
        in_specs.append(pl.BlockSpec((tm, tn), lambda i, j, k: (i, j)))
        args.append(residual)

    return pl.pallas_call(
        functools.partial(_matmul_kernel, act=act,
                          has_residual=residual is not None),
        out_shape=jax.ShapeDtypeStruct((R, Kout), x.dtype),
        grid=grid,
        in_specs=in_specs,
        out_specs=pl.BlockSpec((tm, tn), lambda i, j, k: (i, j)),
        scratch_shapes=[pltpu.VMEM((tm, tn), jnp.float32)],
        compiler_params=pltpu.CompilerParams(
            dimension_semantics=("parallel", "parallel", "arbitrary"),
            vmem_limit_bytes=_VMEM_LIMIT),
    )(*args)


def _ln_linear_kernel(x_ref, g_ref, bln_ref, w_ref, b_ref, o_ref, *, act):
    """Fused LayerNorm(x) @ w + b (+gelu); LN stats in f32, matmul in bf16."""
    x = x_ref[...].astype(jnp.float32)
    mu = jnp.mean(x, axis=-1, keepdims=True)
    xc = x - mu
    var = jnp.mean(xc * xc, axis=-1, keepdims=True)   # biased, like torch LayerNorm
    inv = lax.rsqrt(var + 1e-5)
    xn = xc * inv * g_ref[...].astype(jnp.float32) + bln_ref[...].astype(jnp.float32)
    y = jnp.dot(xn.astype(jnp.bfloat16), w_ref[...].astype(jnp.bfloat16),
                preferred_element_type=jnp.float32)
    y = y + b_ref[...].astype(jnp.float32)
    if act == "gelu":
        y = _gelu_erf(y)
    o_ref[...] = y.astype(o_ref.dtype)


def pallas_ln_linear(x, gamma, beta, w, b, act=None, tm_target=256, tn_target=256):
    """LayerNorm over the last dim of x fused into the following linear."""
    R, Kin = x.shape
    Kout = w.shape[1]
    tm = _pick_tile(R, tm_target, 8)
    tn = _pick_tile(Kout, tn_target, 128)
    grid = (R // tm, Kout // tn)
    return pl.pallas_call(
        functools.partial(_ln_linear_kernel, act=act),
        out_shape=jax.ShapeDtypeStruct((R, Kout), x.dtype),
        grid=grid,
        in_specs=[
            pl.BlockSpec((tm, Kin), lambda i, j: (i, 0)),
            pl.BlockSpec((1, Kin), lambda i, j: (0, 0)),
            pl.BlockSpec((1, Kin), lambda i, j: (0, 0)),
            pl.BlockSpec((Kin, tn), lambda i, j: (0, j)),
            pl.BlockSpec((1, tn), lambda i, j: (0, j)),
        ],
        out_specs=pl.BlockSpec((tm, tn), lambda i, j: (i, j)),
        compiler_params=pltpu.CompilerParams(
            dimension_semantics=("parallel", "parallel"),
            vmem_limit_bytes=_VMEM_LIMIT),
    )(x, gamma.reshape(1, Kin), beta.reshape(1, Kin), w, b.reshape(1, Kout))


def _layernorm_kernel(x_ref, g_ref, b_ref, o_ref):
    x = x_ref[...].astype(jnp.float32)
    mu = jnp.mean(x, axis=-1, keepdims=True)
    xc = x - mu
    var = jnp.mean(xc * xc, axis=-1, keepdims=True)
    inv = lax.rsqrt(var + 1e-5)
    o_ref[...] = (xc * inv * g_ref[...].astype(jnp.float32)
                  + b_ref[...].astype(jnp.float32)).astype(o_ref.dtype)


def pallas_layernorm(x, gamma, beta, tm_target=512):
    """Row-tiled standalone LayerNorm (used for the final encoder/decoder norm)."""
    R, D = x.shape
    tm = _pick_tile(R, tm_target, 8)
    return pl.pallas_call(
        _layernorm_kernel,
        out_shape=jax.ShapeDtypeStruct((R, D), x.dtype),
        grid=(R // tm,),
        in_specs=[
            pl.BlockSpec((tm, D), lambda i: (i, 0)),
            pl.BlockSpec((1, D), lambda i: (0, 0)),
            pl.BlockSpec((1, D), lambda i: (0, 0)),
        ],
        out_specs=pl.BlockSpec((tm, D), lambda i: (i, 0)),
        compiler_params=pltpu.CompilerParams(
            dimension_semantics=("parallel",),
            vmem_limit_bytes=_VMEM_LIMIT),
    )(x, gamma.reshape(1, D), beta.reshape(1, D))


def _attention_kernel(qkv_ref, o_ref, *, num_heads, scale):
    """One batch element per grid step.  qkv_ref block: (1, N, 3C) packed
    [Q | K | V]; output block (1, N, C) — lane-dense, token-major (no head
    transpose needed downstream).  Per-head softmax(q k^T * scale) v."""
    C = o_ref.shape[-1]
    Dh = C // num_heads
    outs = []
    for h in range(num_heads):
        q = qkv_ref[0, :, h * Dh:(h + 1) * Dh].astype(jnp.bfloat16)
        k = qkv_ref[0, :, C + h * Dh:C + (h + 1) * Dh].astype(jnp.bfloat16)
        v = qkv_ref[0, :, 2 * C + h * Dh:2 * C + (h + 1) * Dh].astype(jnp.bfloat16)
        # q @ k^T without materializing a transpose: contract last dims.
        s = lax.dot_general(q, k, (((1,), (1,)), ((), ())),
                            preferred_element_type=jnp.float32) * scale
        s = s - jnp.max(s, axis=-1, keepdims=True)
        p = jnp.exp(s)
        p = p * pl.reciprocal(jnp.sum(p, axis=-1, keepdims=True), approx=True)
        outs.append(jnp.dot(p.astype(jnp.bfloat16), v,
                            preferred_element_type=jnp.float32))
    o_ref[0] = jnp.concatenate(outs, axis=-1).astype(o_ref.dtype)
    # TODO(synk): for long sequences (large N) convert to KV-tiled online-softmax
    # (flash) form so the (N, N) score slab never materializes (v7x 64 MiB VMEM).


def pallas_attention(qkv, num_heads, scale):
    """qkv: (B, N, 3C) packed [Q | K | V] -> (B, N, C) attention output."""
    B, N, C3 = qkv.shape
    C = C3 // 3
    return pl.pallas_call(
        functools.partial(_attention_kernel, num_heads=num_heads, scale=scale),
        out_shape=jax.ShapeDtypeStruct((B, N, C), qkv.dtype),
        grid=(B,),
        in_specs=[pl.BlockSpec((1, N, C3), lambda b: (b, 0, 0))],
        out_specs=pl.BlockSpec((1, N, C), lambda b: (b, 0, 0)),
        compiler_params=pltpu.CompilerParams(
            dimension_semantics=("parallel",),
            vmem_limit_bytes=_VMEM_LIMIT),
    )(qkv)


# ------------------------------ model (glue) ------------------------------

def block_layer(x, p, num_heads):
    B, N, C = x.shape
    scale = (C // num_heads) ** (-0.5)
    x2 = x.reshape(B * N, C)
    # x = x + Attn(LN1(x)) : LN1 fused into QKV matmul, residual fused into proj.
    qkv = pallas_ln_linear(x2, p["n1_g"], p["n1_b"], p["qkv_w"], p["qkv_b"])
    attn = pallas_attention(qkv.reshape(B, N, 3 * C), num_heads, scale)
    x2 = pallas_linear(attn.reshape(B * N, C), p["proj_w"], p["proj_b"], residual=x2)
    # x = x + MLP(LN2(x)) : LN2 fused into fc1, GELU in fc1 epilogue,
    # residual fused into fc2 epilogue.
    h = pallas_ln_linear(x2, p["n2_g"], p["n2_b"], p["fc1_w"], p["fc1_b"], act="gelu")
    x2 = pallas_linear(h, p["fc2_w"], p["fc2_b"], residual=x2)
    return x2.reshape(B, N, C)


def patchify(x, u, p):
    NM, T, V, C = x.shape
    TP, VP = T // u, V // p
    xr = x.reshape(NM, TP, u, VP, p, C)
    xr = jnp.einsum("ntuvpc->ntvupc", xr)
    return xr.reshape(NM, TP * VP, u * p * C)


def joints_embed(x, params, u, p):
    # Conv2d(dim_in, dim_feat, kernel=stride=(u, p)) == patch extraction + matmul.
    NM, T, V, C = x.shape
    TP, VP = T // u, V // p
    xr = x.reshape(NM, TP, u, VP, p, C)
    xr = jnp.transpose(xr, (0, 1, 3, 5, 2, 4))          # (NM, TP, VP, Cin, u, p)
    xr = xr.reshape(NM * TP * VP, C * u * p)
    y = pallas_linear(xr, params["embed_w"], params["embed_b"])
    return y.reshape(NM, TP, VP, -1)


def motion_aware_random_masking(x, x_orig, mask_ratio, tau, key):
    NM, L, D = x.shape
    len_keep = int(L * (1 - mask_ratio))
    diff = jnp.abs(x_orig[:, 1:] - x_orig[:, :-1])
    motion = jnp.concatenate([diff[:, :1], diff], axis=1)       # frame 0 copies frame 1
    motion = motion.mean(axis=3).reshape(NM, L)
    motion = motion / (jnp.max(motion, axis=-1, keepdims=True) * tau + 1e-10)
    prob = jax.nn.softmax(motion, axis=-1)
    u = jax.random.uniform(key, (NM, L), dtype=x.dtype)
    noise = jnp.log(prob) - jnp.log(-jnp.log(u + 1e-10) + 1e-10)
    ids_shuffle = jnp.argsort(noise, axis=1)
    ids_restore = jnp.argsort(ids_shuffle, axis=1)
    ids_keep = ids_shuffle[:, :len_keep]
    x_masked = jnp.take_along_axis(x, ids_keep[:, :, None], axis=1)
    mask = jnp.ones((NM, L), dtype=x.dtype)
    mask = mask.at[:, :len_keep].set(0.0)
    mask = jnp.take_along_axis(mask, ids_restore, axis=1)
    return x_masked, mask, ids_restore, ids_keep


def random_masking(x, mask_ratio, key):
    NM, L, D = x.shape
    len_keep = int(L * (1 - mask_ratio))
    noise = jax.random.uniform(key, (NM, L), dtype=x.dtype)
    ids_shuffle = jnp.argsort(noise, axis=1)
    ids_restore = jnp.argsort(ids_shuffle, axis=1)
    ids_keep = ids_shuffle[:, :len_keep]
    x_masked = jnp.take_along_axis(x, ids_keep[:, :, None], axis=1)
    mask = jnp.ones((NM, L), dtype=x.dtype)
    mask = mask.at[:, :len_keep].set(0.0)
    mask = jnp.take_along_axis(mask, ids_restore, axis=1)
    return x_masked, mask, ids_restore, ids_keep


def forward_encoder(params, cfg, x, mask_ratio, motion_aware_tau, key):
    u, p = cfg["t_patch_size"], cfg["patch_size"]
    x_orig = patchify(x, u, p)
    xe = joints_embed(x, params, u, p)                     # (NM, TP, VP, D)
    NM, TP, VP, D = xe.shape
    xe = xe + params["pos_embed"][:, :, :VP, :] + params["temp_embed"][:, :TP, :, :]
    xe = xe.reshape(NM, TP * VP, D)
    if motion_aware_tau > 0:
        x_orig = x_orig.reshape(NM, TP, VP, -1)
        xe, mask, ids_restore, _ = motion_aware_random_masking(
            xe, x_orig, mask_ratio, motion_aware_tau, key)
    else:
        xe, mask, ids_restore, _ = random_masking(xe, mask_ratio, key)
    for bp in params["blocks"]:
        xe = block_layer(xe, bp, cfg["num_heads"])
    B, N, C = xe.shape
    xe = pallas_layernorm(xe.reshape(B * N, C),
                          params["norm_g"], params["norm_b"]).reshape(B, N, C)
    return xe, mask, ids_restore


def forward_decoder(params, cfg, x, ids_restore):
    NM, Nk, C = x.shape
    TP = cfg["num_frames"] // cfg["t_patch_size"]
    VP = cfg["num_joints"] // cfg["patch_size"]
    L = TP * VP
    x = pallas_linear(x.reshape(NM * Nk, C),
                      params["dec_embed_w"], params["dec_embed_b"])
    Cd = params["dec_embed_w"].shape[1]
    x = x.reshape(NM, Nk, Cd)
    mask_tokens = jnp.broadcast_to(params["mask_token"], (NM, L - Nk, Cd))
    x_ = jnp.concatenate([x, mask_tokens], axis=1)
    x_ = jnp.take_along_axis(x_, ids_restore[:, :, None], axis=1)
    x = x_.reshape(NM, TP, VP, Cd)
    x = x + params["dec_pos_embed"][:, :, :VP, :] + params["dec_temp_embed"][:, :TP, :, :]
    x = x.reshape(NM, L, Cd)
    for bp in params["dec_blocks"]:
        x = block_layer(x, bp, cfg["num_heads"])
    x = pallas_layernorm(x.reshape(NM * L, Cd),
                         params["dec_norm_g"], params["dec_norm_b"])
    return x.reshape(NM, L, Cd)


def extract_motion(x, motion_stride=1):
    diff = x[:, motion_stride:] - x[:, :-motion_stride]
    zeros = jnp.zeros_like(x[:, :motion_stride])
    return jnp.concatenate([diff, zeros], axis=1)


def transformer_forward(params, cfg, x, key, mask_ratio=0.8, motion_stride=1,
                        motion_aware_tau=0.75):
    N, C, T, V, M = x.shape
    x = jnp.transpose(x, (0, 4, 2, 3, 1)).reshape(N * M, T, V, C)
    x_motion = extract_motion(x, motion_stride)   # 'target' arg; unused by the loss
    k_teacher, k_student = jax.random.split(key)
    # Teacher: same weights (deepcopy), mask_ratio forced to 0.  NOTE: like the
    # PyTorch reference, the teacher's tokens are still gumbel-shuffled and never
    # restored; we reproduce that behavior exactly.
    teacher_latent, _, _ = forward_encoder(params, cfg, x, 0.0, motion_aware_tau, k_teacher)
    # Student: masked encode + decode.
    latent, mask, ids_restore = forward_encoder(params, cfg, x, mask_ratio,
                                                motion_aware_tau, k_student)
    pred = forward_decoder(params, cfg, latent, ids_restore)
    # forward_loss: masked L1 between student prediction and teacher latent.
    recon = jnp.abs(pred - teacher_latent)
    loss = jnp.sum(jnp.mean(recon, axis=-1) * mask) / jnp.sum(mask)
    # TODO(synk): the in-place EMA update of the teacher's parameters inside
    # forward_loss mutates a discarded deepcopy and does not affect any output; skipped.
    del x_motion
    return loss, pred, mask


# --------------------------- parameter init -------------------------------

def _xavier_uniform(key, fan_in, fan_out):
    a = math.sqrt(6.0 / (fan_in + fan_out))
    return jax.random.uniform(key, (fan_in, fan_out), jnp.float32, -a, a)


def _trunc_normal(key, shape, std=0.02):
    return std * jax.random.truncated_normal(key, -2.0, 2.0, shape, jnp.float32)


def init_block_params(key, dim, mlp_hidden, mlp_out):
    ks = jax.random.split(key, 4)
    z = lambda n: jnp.zeros((n,), jnp.float32)
    return dict(
        n1_g=jnp.ones((dim,), jnp.float32), n1_b=z(dim),
        qkv_w=_xavier_uniform(ks[0], dim, 3 * dim), qkv_b=z(3 * dim),
        proj_w=_xavier_uniform(ks[1], dim, dim), proj_b=z(dim),
        n2_g=jnp.ones((dim,), jnp.float32), n2_b=z(dim),
        fc1_w=_xavier_uniform(ks[2], dim, mlp_hidden), fc1_b=z(mlp_hidden),
        fc2_w=_xavier_uniform(ks[3], mlp_hidden, mlp_out), fc2_b=z(mlp_out),
    )


def init_params(key, cfg):
    D, Dd, Ci = cfg["dim_feat"], cfg["decoder_dim_feat"], cfg["dim_in"]
    u, p = cfg["t_patch_size"], cfg["patch_size"]
    TP = cfg["num_frames"] // u
    VP = cfg["num_joints"] // p
    mlp_hidden = int(D * cfg["mlp_ratio"])
    dec_mlp_hidden = int(Dd * cfg["mlp_ratio"])
    keys = jax.random.split(key, 10 + cfg["depth"] + cfg["decoder_depth"])
    ki = iter(keys)
    z = lambda n: jnp.zeros((n,), jnp.float32)
    params = dict(
        embed_w=_xavier_uniform(next(ki), Ci * u * p, D), embed_b=z(D),
        pos_embed=_trunc_normal(next(ki), (1, 1, VP, D)),
        temp_embed=_trunc_normal(next(ki), (1, TP, 1, D)),
        norm_g=jnp.ones((D,), jnp.float32), norm_b=z(D),
        dec_embed_w=_xavier_uniform(next(ki), D, Dd), dec_embed_b=z(Dd),
        mask_token=_trunc_normal(next(ki), (1, 1, Dd)),
        dec_pos_embed=_trunc_normal(next(ki), (1, 1, VP, Dd)),
        dec_temp_embed=_trunc_normal(next(ki), (1, TP, 1, Dd)),
        dec_norm_g=jnp.ones((Dd,), jnp.float32), dec_norm_b=z(Dd),
        # decoder_pred exists in the torch module but is never applied in forward().
        dec_pred_w=_xavier_uniform(next(ki), Dd, u * p * Ci), dec_pred_b=z(u * p * Ci),
    )
    params["blocks"] = [init_block_params(next(ki), D, mlp_hidden, D)
                        for _ in range(cfg["depth"])]
    params["dec_blocks"] = [init_block_params(next(ki), Dd, dec_mlp_hidden, Dd)
                            for _ in range(cfg["decoder_depth"])]
    return params


if __name__ == "__main__":
    cfg = dict(dim_in=3, dim_feat=32, decoder_dim_feat=32, depth=2, decoder_depth=2,
               num_heads=4, mlp_ratio=4, num_frames=8, num_joints=5,
               patch_size=1, t_patch_size=4)
    root = jax.random.PRNGKey(0)
    k_params, k_x, k_mask = jax.random.split(root, 3)
    params = init_params(k_params, cfg)

    # x: (N, C, T, V, M) like the PyTorch forward expects.
    N, C, T, V, M = 2, cfg["dim_in"], cfg["num_frames"], cfg["num_joints"], 2
    x = jax.random.normal(k_x, (N, C, T, V, M), dtype=jnp.float32)

    loss, pred, mask = transformer_forward(params, cfg, x, k_mask,
                                           mask_ratio=0.8, motion_stride=1,
                                           motion_aware_tau=0.75)
    jax.block_until_ready((loss, pred, mask))
    print("KERNEL_OK")
</pallas_src>

<mosaic_0001>
module attributes {stable_mosaic.version = 11 : i64} {
  func.func @_matmul_kernel(%arg0: i32, %arg1: i32, %arg2: i32, %arg3: memref<40x12xf32, #tpu.memory_space<vmem>>, %arg4: memref<12x32xf32, #tpu.memory_space<vmem>>, %arg5: memref<1x32xf32, #tpu.memory_space<vmem>>, %arg6: memref<40x32xf32, #tpu.memory_space<vmem>>, %arg7: memref<40x32xf32, #tpu.memory_space<vmem>>) attributes {dimension_semantics = [#tpu.dimension_semantics<parallel>, #tpu.dimension_semantics<parallel>, #tpu.dimension_semantics<arbitrary>], iteration_bounds = array<i64: 1, 1, 1>, scalar_prefetch = 0 : i64, scratch_operands = 1 : i64, tpu.core_type = #tpu.core_type<tc>, window_params = [{transform_indices = @transform_0, window_bounds = array<i64: 40, 12>}, {transform_indices = @transform_1, window_bounds = array<i64: 12, 32>}, {transform_indices = @transform_2, window_bounds = array<i64: 1, 32>}, {transform_indices = @transform_3, window_bounds = array<i64: 40, 32>}]} {
    %c0_i32 = arith.constant 0 : i32
    %0 = arith.cmpi eq, %arg2, %c0_i32 : i32
    %1 = arith.extui %0 : i1 to i32
    %c0_i32_0 = arith.constant 0 : i32
    %2 = arith.cmpi ne, %1, %c0_i32_0 : i32
    scf.if %2 {
      %cst_10 = arith.constant 0.000000e+00 : f32
      %14 = vector.broadcast %cst_10 : f32 to vector<40x32xf32>
      %c0_11 = arith.constant 0 : index
      %c0_12 = arith.constant 0 : index
      %15 = vector.load %arg7[%c0_11, %c0_12] : memref<40x32xf32, #tpu.memory_space<vmem>>, vector<40x32xf32>
      tpu.vector_store %arg7[%c0_11, %c0_12], %14 {strides = array<i32>} : memref<40x32xf32, #tpu.memory_space<vmem>>, vector<40x32xf32>,
    } else {
    }
    %c0 = arith.constant 0 : index
    %c0_1 = arith.constant 0 : index
    %3 = vector.load %arg7[%c0, %c0_1] : memref<40x32xf32, #tpu.memory_space<vmem>>, vector<40x32xf32>
    %c0_2 = arith.constant 0 : index
    %c0_3 = arith.constant 0 : index
    %4 = vector.load %arg3[%c0_2, %c0_3] : memref<40x12xf32, #tpu.memory_space<vmem>>, vector<40x12xf32>
    %5 = arith.truncf %4 : vector<40x12xf32> to vector<40x12xbf16>
    %c0_4 = arith.constant 0 : index
    %c0_5 = arith.constant 0 : index
    %6 = vector.load %arg4[%c0_4, %c0_5] : memref<12x32xf32, #tpu.memory_space<vmem>>, vector<12x32xf32>
    %7 = arith.truncf %6 : vector<12x32xf32> to vector<12x32xbf16>
    %cst = arith.constant dense<0.000000e+00> : vector<40x32xf32>
    %8 = tpu.matmul %5, %7, %cst {dimension_numbers = #tpu.dot_dimension_numbers<[1], [0], [0], [1], [0, 0, 1, 1], [], []>} : vector<40x12xbf16>, vector<12x32xbf16>, vector<40x32xf32> -> vector<40x32xf32>
    %9 = arith.addf %3, %8 : vector<40x32xf32>
    %c0_6 = arith.constant 0 : index
    %c0_7 = arith.constant 0 : index
    %10 = vector.load %arg7[%c0_6, %c0_7] : memref<40x32xf32, #tpu.memory_space<vmem>>, vector<40x32xf32>
    tpu.vector_store %arg7[%c0_6, %c0_7], %9 {strides = array<i32>} : memref<40x32xf32, #tpu.memory_space<vmem>>, vector<40x32xf32>,
    %c0_i32_8 = arith.constant 0 : i32
    %11 = arith.cmpi eq, %arg2, %c0_i32_8 : i32
    %12 = arith.extui %11 : i1 to i32
    %c0_i32_9 = arith.constant 0 : i32
    %13 = arith.cmpi ne, %12, %c0_i32_9 : i32
    scf.if %13 {
      %c0_10 = arith.constant 0 : index
      %c0_11 = arith.constant 0 : index
      %14 = vector.load %arg7[%c0_10, %c0_11] : memref<40x32xf32, #tpu.memory_space<vmem>>, vector<40x32xf32>
      %c0_12 = arith.constant 0 : index
      %c0_13 = arith.constant 0 : index
      %15 = vector.load %arg5[%c0_12, %c0_13] : memref<1x32xf32, #tpu.memory_space<vmem>>, vector<1x32xf32>
      %16 = vector.broadcast %15 : vector<1x32xf32> to vector<40x32xf32>
      %17 = arith.addf %14, %16 : vector<40x32xf32>
      %c0_14 = arith.constant 0 : index
      %c0_15 = arith.constant 0 : index
      %18 = vector.load %arg6[%c0_14, %c0_15] : memref<40x32xf32, #tpu.memory_space<vmem>>, vector<40x32xf32>
      tpu.vector_store %arg6[%c0_14, %c0_15], %17 {strides = array<i32>} : memref<40x32xf32, #tpu.memory_space<vmem>>, vector<40x32xf32>,
    } else {
    }
    return
  }
  func.func @transform_0(%arg0: i32, %arg1: i32, %arg2: i32) -> (i32, i32) {
    %c0_i32 = arith.constant 0 : i32
    return %arg0, %arg2 : i32, i32
  }
  func.func @transform_1(%arg0: i32, %arg1: i32, %arg2: i32) -> (i32, i32) {
    %c0_i32 = arith.constant 0 : i32
    return %arg2, %arg1 : i32, i32
  }
  func.func @transform_2(%arg0: i32, %arg1: i32, %arg2: i32) -> (i32, i32) {
    %c0_i32 = arith.constant 0 : i32
    %c0_i32_0 = arith.constant 0 : i32
    return %c0_i32, %arg1 : i32, i32
  }
  func.func @transform_3(%arg0: i32, %arg1: i32, %arg2: i32) -> (i32, i32) {
    %c0_i32 = arith.constant 0 : i32
    return %arg0, %arg1 : i32, i32
  }
}

</mosaic_0001>

<bundles_post_ra>
// kernel: tpu_custom_call.1
= control target key start
LH: loop header
LB: loop body
LE: loop exit
PB: predicated region body
PF: predicated region fallthrough
CT: control target
= control target key end

     0   :  { %v177_v0 = vmov 0.0   ;;  %vm51_vm0 = vcmask 1045504   ;;  %vm19_vm1 = vcmask 261120   ;;  %vm178_vm2 = vmmov 0   ;;  %s256_s1 = inlined_call_operand.vmem [shape: f32[12,32], index: 1, kind: input, shape index: {}]   ;;  %s257_s0 = inlined_call_operand.vmem [shape: f32[40,12], index: 0, kind: input, shape index: {}]   ;;  %s258_s2 = inlined_call_operand.vmem [shape: f32[1,32], index: 2, kind: input, shape index: {}]   ;;  %s259_s3 = inlined_call_operand.vmem [shape: f32[40,32], index: 3, kind: output, shape index: {}]  }
   0x1   :  { %159 = vmatprep.subr.bf16.mxu0 %v177_v0  ;;  %173 = vmatprep.subr.bf16.mxu1 %v177_v0  ;;  %v38_v1 = vld [vmem:[%s256_s1] sm:$0xff]  ;;  %v39_v2 = vld [vmem:[%s256_s1 + $0x8] sm:$0xf]  ;;  %v32_v6 = vld [vmem:[%s257_s0 + $0x10] sm:$0xff]  ;;  %20 = vst.msk [vmem:[#allocation2] sm:$0xff] %vm19_vm1, %v177_v0  ;;  %vm41_vm3 = vcmask 97280  }
   0x2   :  { %v30_v3 = vld [vmem:[%s257_s0] sm:$0xff]  ;;  %v40_v4 = vpack.c.bf16 %v39_v2, %v38_v1  ;;  %161 = vmatprep.mubr.msk.bf16.mxu0 %vm178_vm2, %v177_v0  ;;  %165 = vmatprep.mubr.msk.bf16.mxu1 %vm178_vm2, %v177_v0  ;;  %v31_v5 = vld [vmem:[%s257_s0 + $0x8] sm:$0xff]  ;;  %v33_v7 = vld [vmem:[%s257_s0 + $0x18] sm:$0xff]  ;;  %21 = vst.msk [vmem:[#allocation2 + $0x8] sm:$0xff] %vm19_vm1, %v177_v0 }
   0x3   :  { %22 = vst.msk [vmem:[#allocation2 + $0x10] sm:$0xff] %vm19_vm1, %v177_v0  ;;  %23 = vst.msk [vmem:[#allocation2 + $0x18] sm:$0xff] %vm19_vm1, %v177_v0  ;;  %v35_v9 = vpack.c.bf16 %v31_v5, %v30_v3  ;;  %v36_v10 = vpack.c.bf16 %v33_v7, %v32_v6  ;;  %v34_v11 = vld [vmem:[%s257_s0 + $0x20] sm:$0xff] }
   0x4   :  { %24 = vst.msk [vmem:[#allocation2 + $0x20] sm:$0xff] %vm19_vm1, %v177_v0  ;;  %v53_v8 = vsel %vm51_vm0, %v40_v4, 0  ;;  %v37_v12 = vpack.c.bf16 %v34_v11, %v34_v11  ;;  %v154_v30 = vld [vmem:[%s258_s2] ss:$0 sm:$0xff] }
   0x5   :  { %160 = vmatpush3.bf16.msra.mxu0 %v53_v8  ;;  %174 = vmatpush3.bf16.msra.mxu1 %v53_v8 }
   0x8   :  { %162 = vmatmul.mubr.msk.bf16.vlgmr.msra.gmra.mxu0 %vm41_vm3, %v35_v9  ;;  %166 = vmatmul.mubr.msk.bf16.vlgmr.msra.gmra.mxu1 %vm41_vm3, %v36_v10  ;;  %v25_v13 = vld [vmem:[#allocation2] sm:$0xff] }
   0x9   :  { %169 = vmatprep.mubr.msk.bf16.mxu1 %vm178_vm2, %v177_v0  ;;  %v26_v21 = vld [vmem:[#allocation2 + $0x8] sm:$0xff] }
   0xa   :  { %v27_v14 = vld [vmem:[#allocation2 + $0x10] sm:$0xff]  ;;  %v28_v22 = vld [vmem:[#allocation2 + $0x18] sm:$0xff] }
   0xb   :  { %v29_v29 = vld [vmem:[#allocation2 + $0x20] sm:$0xff] }
  0x10   :  { %170 = vmatmul.mubr.msk.bf16.gmra.mxu1 %vm41_vm3, %v37_v12 }
  0xc8   :  { %v89_v15 = vpop.f32.mrf.mxu0  ;;  %v97_v16 = vpop.f32.mrf.mxu1 }
  0xc9   :  { %v111_v17 = vadd.f32 %v89_v15, %v25_v13  ;;  %v113_v18 = vadd.f32 %v97_v16, %v27_v14 }
  0xca   :  { %v163_v19 = vpop.f32.mrf.mxu0  ;;  %v167_v20 = vpop.f32.mrf.mxu1 }
  0xcb   :  { %117 = vst.msk [vmem:[#allocation2] sm:$0xff] %vm19_vm1, %v111_v17  ;;  %119 = vst.msk [vmem:[#allocation2 + $0x10] sm:$0xff] %vm19_vm1, %v113_v18 }
  0xcc   :  { %v92_v23 = vpop.f32.mrf.mxu0  ;;  %v100_v24 = vpop.f32.mrf.mxu1 }
  0xcd   :  { %v112_v25 = vadd.f32 %v92_v23, %v26_v21  ;;  %v114_v26 = vadd.f32 %v100_v24, %v28_v22 }
  0xce   :  { %v164_v27 = vpop.f32.mrf.mxu0  ;;  %v168_v28 = vpop.f32.mrf.mxu1 }
  0xcf   :  { %118 = vst.msk [vmem:[#allocation2 + $0x8] sm:$0xff] %vm19_vm1, %v112_v25  ;;  %120 = vst.msk [vmem:[#allocation2 + $0x18] sm:$0xff] %vm19_vm1, %v114_v26 }
  0xd0   :  { %v105_v31 = vpop.f32.mrf.mxu1 }
  0xd1   :  { %v115_v32 = vadd.f32 %v105_v31, %v29_v29 }
  0xd2   :  { %v125_v33 = vld [vmem:[#allocation2] sm:$0xff]  ;;  %v127_v34 = vld [vmem:[#allocation2 + $0x10] sm:$0xff]  ;;  %v171_v35 = vpop.f32.mrf.mxu1 }
  0xd3   :  { %v137_v36 = vadd.f32 %v154_v30, %v125_v33  ;;  %v139_v37 = vadd.f32 %v154_v30, %v127_v34  ;;  %121 = vst.msk [vmem:[#allocation2 + $0x20] sm:$0xff] %vm19_vm1, %v115_v32 }
  0xd4   :  { %v108_v38 = vpop.f32.mrf.mxu1 }
  0xd5   :  { %142 = vst.msk [vmem:[%s259_s3] sm:$0xff] %vm19_vm1, %v137_v36  ;;  %144 = vst.msk [vmem:[%s259_s3 + $0x10] sm:$0xff] %vm19_vm1, %v139_v37 }
  0xd6   :  { %v126_v39 = vld [vmem:[#allocation2 + $0x8] sm:$0xff]  ;;  %v128_v40 = vld [vmem:[#allocation2 + $0x18] sm:$0xff]  ;;  %v172_v41 = vpop.f32.mrf.mxu1 }
  0xd7   :  { %v138_v42 = vadd.f32 %v154_v30, %v126_v39  ;;  %v140_v43 = vadd.f32 %v154_v30, %v128_v40 }
  0xd9   :  { %143 = vst.msk [vmem:[%s259_s3 + $0x8] sm:$0xff] %vm19_vm1, %v138_v42  ;;  %145 = vst.msk [vmem:[%s259_s3 + $0x18] sm:$0xff] %vm19_vm1, %v140_v43 }
  0xda   :  { %v129_v44 = vld [vmem:[#allocation2 + $0x20] sm:$0xff] }
  0xdb   :  { %v141_v45 = vadd.f32 %v154_v30, %v129_v44 }
  0xdd   :  { %146 = vst.msk [vmem:[%s259_s3 + $0x20] sm:$0xff] %vm19_vm1, %v141_v45 }

</bundles_post_ra>
